<compile_context>
chip_gen: v7x
topology: tpu7x:2x2x1
jax: 0.10.0
libtpu: 0.0.40
codegen_flags: <defaults>
</compile_context>

<pallas_src>
import math

import jax
import jax.numpy as jnp
from jax.experimental import pallas as pl
from jax.experimental.pallas import tpu as pltpu


def _round_up(v, m):
    return (v + m - 1) // m * m


def _vmem_capacity_bytes():
    try:
        return int(pltpu.get_tpu_info().vmem_capacity_bytes)
    except Exception:
        return 64 << 20  # conservative: assume v7x-class 64 MiB per TensorCore


def _pick_b_blk(B, block_budget_bytes, per_batch_bytes):
    """Largest divisor of B that fits the block budget; megacore friendly."""
    cap = max(1, min(B, block_budget_bytes // max(per_batch_bytes, 1)))
    if B >= 2:
        cap = min(cap, -(-B // 2))  # ceil(B/2): >= 2 grid steps for 2-TC v7x
    divisors = [d for d in range(1, B + 1) if B % d == 0 and d <= cap]
    even_steps = [d for d in divisors if (B // d) % 2 == 0]
    return max(even_steps) if even_steps else max(divisors)


def data_embedding(x, x_mark, wc, bc, wt, bt, pe_table, *, b_blk=None,
                   out_dtype=None):
    """x: (B, L, c_in) f32, x_mark: (B, L, d_inp) f32 -> (B, L, d_model)."""
    B, L, c_in = x.shape
    d_inp = x_mark.shape[-1]
    d_model = wc.shape[-1]
    out_dtype = x.dtype if out_dtype is None else out_dtype
    out_itemsize = jnp.dtype(out_dtype).itemsize

    F = c_in + d_inp           # lanes of the fused input stream
    K = 3 * c_in + d_inp       # contraction dim of the fused matmul
    d_out = _round_up(d_model, 128)   # lane-dense output columns

    # Fused weight, ordered to match the in-kernel concat [x_prev, [x,xm], x_next]:
    #   [W_prev ; W_cur ; W_temp ; W_next]
    w_fused = jnp.concatenate([wc[0], wc[1], wt, wc[2]], axis=0)   # (K, d_model)
    # Fold positional table and both biases into one additive table.
    add = pe_table[:L] + bc[None, :] + bt[None, :]                 # (L, d_model)
    if d_out != d_model:
        w_fused = jnp.pad(w_fused, ((0, 0), (0, d_out - d_model)))
        add = jnp.pad(add, ((0, 0), (0, d_out - d_model)))

    # Single fused input stream: one DMA, one 128-lane tile instead of two.
    xcat = jnp.concatenate([x, x_mark], axis=-1)                   # (B, L, F)

    # ---- generation-aware tiling / VMEM budget (padded tile sizes) ----
    L_pad = _round_up(L, 8)
    F_pad = _round_up(F, 128)
    K_pad = _round_up(K, 8)
    in_bytes_per_batch = 4 * L_pad * F_pad
    out_bytes_per_batch = out_itemsize * L_pad * d_out
    per_batch_blk = 2 * (in_bytes_per_batch + out_bytes_per_batch)  # dbl-buffered

    vmem_cap = _vmem_capacity_bytes()
    if vmem_cap >= (100 << 20):          # v5e / v6e class (128 MiB VMEM per TC)
        block_budget = 16 << 20
        vmem_limit_cap = 64 << 20
    else:                                # v7x class (64 MiB VMEM per TC)
        block_budget = 8 << 20
        vmem_limit_cap = 30 << 20

    if b_blk is None:
        b_blk = _pick_b_blk(B, block_budget, per_batch_blk)
    n_blocks = pl.cdiv(B, b_blk)

    table_bytes = 4 * (K_pad * d_out + L_pad * d_out)
    vmem_needed = b_blk * per_batch_blk + 2 * table_bytes  # tables dbl-buffered
    vmem_limit = int(min(max(vmem_needed + (4 << 20), 8 << 20), vmem_limit_cap))

    flops = 2 * B * L * K * d_out
    bytes_accessed = (4 * xcat.size + 4 * w_fused.size + 4 * add.size
                      + out_itemsize * B * L * d_out)

    def kernel(xc_ref, w_ref, add_ref, o_ref):
        # xc_ref:  (b_blk, L, F)   fused [x, x_mark] block
        # w_ref:   (K, d_out)      fused [W_prev; W_cur; W_temp; W_next]
        # add_ref: (L, d_out)      pe[:L] + conv_bias + temporal_bias
        # o_ref:   (b_blk, L, d_out)
        xc = xc_ref[...]
        bb, Lk, _ = xc.shape
        w = w_ref[...]
        add_tab = add_ref[...]
        # Circular conv taps built in-register on the XLU (no HBM im2col);
        # one roll pair for the whole 3-D block.
        x_prev = pltpu.roll(xc, 1, axis=1)[:, :, :c_in]        # x[t-1]
        x_next = pltpu.roll(xc, Lk - 1, axis=1)[:, :, :c_in]   # x[t+1]
        feat = jnp.concatenate([x_prev, xc, x_next], axis=-1)  # (bb, L, K)
        if Lk % 8 == 0:
            # Single MXU stream with M = bb*L rows (sublane-aligned reshape).
            feat2d = feat.reshape(bb * Lk, feat.shape[-1])
            out2d = jnp.dot(feat2d, w, preferred_element_type=jnp.float32)
            out = out2d.reshape(bb, Lk, w.shape[-1]) + add_tab
            o_ref[...] = out.astype(o_ref.dtype)
        else:
            # Rare fallback (L not a multiple of 8): per-batch 2-D dots to avoid
            # a non-sublane-aligned reshape.
            for b in range(bb):
                ob = jnp.dot(feat[b], w, preferred_element_type=jnp.float32)
                o_ref[b] = (ob + add_tab).astype(o_ref.dtype)

    out = pl.pallas_call(
        kernel,
        out_shape=jax.ShapeDtypeStruct((B, L, d_out), out_dtype),
        grid=(n_blocks,),
        in_specs=[
            pl.BlockSpec((b_blk, L, F), lambda i: (i, 0, 0)),
            pl.BlockSpec((K, d_out), lambda i: (0, 0)),
            pl.BlockSpec((L, d_out), lambda i: (0, 0)),
        ],
        out_specs=pl.BlockSpec((b_blk, L, d_out), lambda i: (i, 0, 0)),
        compiler_params=pltpu.CompilerParams(
            dimension_semantics=("parallel",),
            vmem_limit_bytes=vmem_limit),
        cost_estimate=pl.CostEstimate(
            flops=flops, transcendentals=0, bytes_accessed=bytes_accessed),
    )(xcat, w_fused, add)

    if d_out != d_model:
        out = out[..., :d_model]
    return out


def make_positional_table(len_max, d_model):
    position = jnp.arange(len_max, dtype=jnp.float32)[:, None]
    div_term = jnp.exp(jnp.arange(0, d_model, 2, dtype=jnp.float32)
                       * (-(math.log(10000.0) / d_model)))
    pe = jnp.zeros((len_max, d_model), dtype=jnp.float32)
    pe = pe.at[:, 0::2].set(jnp.sin(position * div_term))
    pe = pe.at[:, 1::2].set(jnp.cos(position * div_term))
    return pe


def init_params(key, c_in, d_model, d_inp):
    k1, k2, k3, k4 = jax.random.split(key, 4)
    # Conv1d weight (kaiming_normal_, fan_in = c_in*3, leaky_relu gain)
    fan_in = c_in * 3
    gain = math.sqrt(2.0 / (1.0 + 0.01 ** 2))
    std = gain / math.sqrt(fan_in)
    w_torch = std * jax.random.normal(k1, (d_model, c_in, 3), dtype=jnp.float32)
    # Per-tap matmul weights: wc[k, c, o] = w_torch[o, c, k].
    # PyTorch Conv1d(padding=1, circular) cross-correlation: tap 0 multiplies
    # x[t-1], tap 1 x[t], tap 2 x[t+1].
    wc = jnp.transpose(w_torch, (2, 1, 0))                     # (3, c_in, d_model)
    bound_c = 1.0 / math.sqrt(fan_in)
    bc = jax.random.uniform(k2, (d_model,), jnp.float32, -bound_c, bound_c)
    # Temporal Linear(d_inp, d_model)
    bound_t = 1.0 / math.sqrt(d_inp)
    wt = jax.random.uniform(k3, (d_inp, d_model), jnp.float32, -bound_t, bound_t)
    bt = jax.random.uniform(k4, (d_model,), jnp.float32, -bound_t, bound_t)
    return wc, bc, wt, bt


def reference(x, x_mark, wc, bc, wt, bt, pe_table):
    """Literal mirror of PyTorch Conv1d(k=3, padding=1, circular) + pos + temporal."""
    L = x.shape[1]
    x_pad = jnp.concatenate([x[:, -1:], x, x[:, :1]], axis=1)   # circular pad=1
    val = sum(x_pad[:, k:k + L] @ wc[k] for k in range(3)) + bc
    temp = x_mark @ wt + bt
    return val + pe_table[None, :L] + temp


if __name__ == "__main__":
    B, L, c_in, d_model = 2, 8, 4, 32
    d_inp = 4  # freq='h'

    key = jax.random.PRNGKey(0)
    kx, km, kp = jax.random.split(key, 3)
    x = jax.random.normal(kx, (B, L, c_in), dtype=jnp.float32)
    x_mark = jax.random.normal(km, (B, L, d_inp), dtype=jnp.float32)

    wc, bc, wt, bt = init_params(kp, c_in, d_model, d_inp)
    pe_table = make_positional_table(4096, d_model)

    ref = reference(x, x_mark, wc, bc, wt, bt, pe_table)

    # f32 path: exact check vs the f32 reference.
    out = data_embedding(x, x_mark, wc, bc, wt, bt, pe_table)
    out = jax.block_until_ready(out)
    assert out.shape == (B, L, d_model)
    assert jnp.allclose(out, ref, rtol=1e-5, atol=1e-5), "mismatch vs JAX reference"

    # bf16-output path (halves the dominant HBM write stream); looser check.
    out_bf16 = data_embedding(x, x_mark, wc, bc, wt, bt, pe_table,
                              out_dtype=jnp.bfloat16)
    out_bf16 = jax.block_until_ready(out_bf16)
    assert out_bf16.dtype == jnp.bfloat16
    assert jnp.allclose(out_bf16.astype(jnp.float32), ref, rtol=5e-2, atol=5e-2), \
        "bf16 output mismatch vs JAX reference"

    print("KERNEL_OK")
</pallas_src>

<mosaic_0001>
module attributes {stable_mosaic.version = 11 : i64} {
  func.func @kernel(%arg0: i32, %arg1: memref<1x8x8xf32, #tpu.memory_space<vmem>>, %arg2: memref<16x128xf32, #tpu.memory_space<vmem>>, %arg3: memref<8x128xf32, #tpu.memory_space<vmem>>, %arg4: memref<1x8x128xf32, #tpu.memory_space<vmem>>) attributes {dimension_semantics = [#tpu.dimension_semantics<parallel>], iteration_bounds = array<i64: 2>, scalar_prefetch = 0 : i64, scratch_operands = 0 : i64, tpu.core_type = #tpu.core_type<tc>, window_params = [{transform_indices = @transform_0, window_bounds = array<i64: 1, 8, 8>}, {pipeline_mode = #tpu.pipeline_mode<synchronous>, transform_indices = @transform_1, window_bounds = array<i64: 16, 128>}, {pipeline_mode = #tpu.pipeline_mode<synchronous>, transform_indices = @transform_2, window_bounds = array<i64: 8, 128>}, {transform_indices = @transform_3, window_bounds = array<i64: 1, 8, 128>}]} {
    %c0 = arith.constant 0 : index
    %c0_0 = arith.constant 0 : index
    %c0_1 = arith.constant 0 : index
    %0 = vector.load %arg1[%c0, %c0_0, %c0_1] : memref<1x8x8xf32, #tpu.memory_space<vmem>>, vector<1x8x8xf32>
    %c0_2 = arith.constant 0 : index
    %c0_3 = arith.constant 0 : index
    %1 = vector.load %arg2[%c0_2, %c0_3] : memref<16x128xf32, #tpu.memory_space<vmem>>, vector<16x128xf32>
    %c0_4 = arith.constant 0 : index
    %c0_5 = arith.constant 0 : index
    %2 = vector.load %arg3[%c0_4, %c0_5] : memref<8x128xf32, #tpu.memory_space<vmem>>, vector<8x128xf32>
    %c1_i32 = arith.constant 1 : i32
    %3 = tpu.dynamic_rotate %0 by %c1_i32 dim 1 : vector<1x8x8xf32>, i32 -> vector<1x8x8xf32>
    %4 = vector.extract_strided_slice %3 {offsets = [0, 0, 0], sizes = [1, 8, 4], strides = [1, 1, 1]} : vector<1x8x8xf32> to vector<1x8x4xf32>
    %c7_i32 = arith.constant 7 : i32
    %5 = tpu.dynamic_rotate %0 by %c7_i32 dim 1 : vector<1x8x8xf32>, i32 -> vector<1x8x8xf32>
    %6 = vector.extract_strided_slice %5 {offsets = [0, 0, 0], sizes = [1, 8, 4], strides = [1, 1, 1]} : vector<1x8x8xf32> to vector<1x8x4xf32>
    %7 = tpu.concatenate %4, %0, %6 in 2 : vector<1x8x4xf32>, vector<1x8x8xf32>, vector<1x8x4xf32> -> vector<1x8x16xf32>
    %8 = vector.shape_cast %7 : vector<1x8x16xf32> to vector<8x16xf32>
    %cst = arith.constant dense<0.000000e+00> : vector<8x128xf32>
    %9 = tpu.matmul %8, %1, %cst {dimension_numbers = #tpu.dot_dimension_numbers<[1], [0], [0], [1], [0, 0, 1, 1], [], []>} : vector<8x16xf32>, vector<16x128xf32>, vector<8x128xf32> -> vector<8x128xf32>
    %10 = vector.shape_cast %9 : vector<8x128xf32> to vector<1x8x128xf32>
    %11 = vector.shape_cast %2 : vector<8x128xf32> to vector<1x8x128xf32>
    %12 = arith.addf %10, %11 : vector<1x8x128xf32>
    %c0_6 = arith.constant 0 : index
    %c0_7 = arith.constant 0 : index
    %c0_8 = arith.constant 0 : index
    %13 = vector.load %arg4[%c0_6, %c0_7, %c0_8] : memref<1x8x128xf32, #tpu.memory_space<vmem>>, vector<1x8x128xf32>
    tpu.vector_store %arg4[%c0_6, %c0_7, %c0_8], %12 {strides = array<i32>} : memref<1x8x128xf32, #tpu.memory_space<vmem>>, vector<1x8x128xf32>,
    return
  }
  func.func @transform_0(%arg0: i32) -> (i32, i32, i32) {
    %c0_i32 = arith.constant 0 : i32
    %c0_i32_0 = arith.constant 0 : i32
    %c0_i32_1 = arith.constant 0 : i32
    return %arg0, %c0_i32, %c0_i32_0 : i32, i32, i32
  }
  func.func @transform_1(%arg0: i32) -> (i32, i32) {
    %c0_i32 = arith.constant 0 : i32
    %c0_i32_0 = arith.constant 0 : i32
    %c0_i32_1 = arith.constant 0 : i32
    return %c0_i32, %c0_i32_0 : i32, i32
  }
  func.func @transform_2(%arg0: i32) -> (i32, i32) {
    %c0_i32 = arith.constant 0 : i32
    %c0_i32_0 = arith.constant 0 : i32
    %c0_i32_1 = arith.constant 0 : i32
    return %c0_i32, %c0_i32_0 : i32, i32
  }
  func.func @transform_3(%arg0: i32) -> (i32, i32, i32) {
    %c0_i32 = arith.constant 0 : i32
    %c0_i32_0 = arith.constant 0 : i32
    %c0_i32_1 = arith.constant 0 : i32
    return %arg0, %c0_i32, %c0_i32_0 : i32, i32, i32
  }
}

</mosaic_0001>

<bundles_post_ra>
// kernel: tpu_custom_call.1
= control target key start
LH: loop header
LB: loop body
LE: loop exit
PB: predicated region body
PF: predicated region fallthrough
CT: control target
= control target key end

     0   :  { %8 = vsyncpa [#allocation3], 0  ;;  %s936_s0 = inlined_call_operand.hbm [shape: f32[2,8,8], index: 0, kind: input, shape index: {}]   ;;  %s937_s1 = inlined_call_operand.hbm [shape: f32[16,128], index: 1, kind: input, shape index: {}]   ;;  %s938_s2 = inlined_call_operand.hbm [shape: f32[8,128], index: 2, kind: input, shape index: {}]   ;;  %s939_s3 = inlined_call_operand.hbm [shape: f32[2,8,128], index: 3, kind: output, shape index: {}]  }
   0x1   :  { %10 = vsyncpa [#allocation3 + $0x1], 0 }
   0x2   :  { %11 = vsyncpa [#allocation6], 0 }
   0x3   :  { %12 = vsyncpa [#allocation4], 0 }
   0x4   :  { %14 = vsyncpa [#allocation4 + $0x1], 0  ;;  %s703_s12 = smov 0   ;;  %s705_s13 = smov 0  }
   0x5   :  { %s707_s14 = smov 0   ;;  %s709_s15 = smov 0  }
   0x6 LB: > { %s724_s16 = sadd.s32 4294967295, %s670_s15   ;;  %s410_s17 = sadd.s32 4294967294, %s670_s15   ;;  %s670_s15 = sphi %s709_s15, %s959_s15   ;;  %s666_s14 = sphi %s707_s14, %s958_s14   ;;  %s662_s13 = sphi %s705_s13, %s957_s13   ;;  %s658_s12 = sphi %s703_s12, %s956_s12  }
   0x7   : > { %p40_p0 = scmp.ne.s32.totalorder %s662_s13, %s658_s12  ;;  %p940_p1 = scmp.eq.s32.totalorder %s724_s16, 0 }
   0x8   : > { %p112_p3 = scmp.eq.s32.totalorder %s410_s17, 1  ;;  %p411_p5 = scmp.ge.s32.totalorder %s670_s15, 1 }
   0x9   : > { %p733_p4 = por %p940_p1, %p40_p0  ;;  %p119_p7 = scmp.lt.s32.totalorder %s670_s15, 3 }
   0xa   : > { %p738_p6 = por %p112_p3, %p40_p0  ;;  %s672_s21 = smov [#allocation5]  }
   0xb   : > { %s943_s18 = scalar_select %p733_p4, 1, 0 }
   0xc   : > { %s944_s19 = scalar_select %p738_p6, 1, 0 }
   0xd   : > { %p743_p8 = pnand %p411_p5, %p119_p7  ;;  %s131_s22 = sshll.u32 %s672_s21, 4  ;;  %s747_s22 = int_to_ptr.vmem [resolvable:$true] %s131_s22 }
   0xe   : > { %s673_s24 = smov [#allocation7]   ;;  %s514_s28 = scalar_lea.hbm %s937_s1, 256 }
   0xf   : > { %p452_p9 = pneg %p743_p8  ;;  %s145_s25 = sshll.u32 %s673_s24, 4  ;;  %s758_s25 = int_to_ptr.vmem [resolvable:$true] %s145_s25 }
  0x10   : > { %p515_p12 = scmp.ne.s32.totalorder %s937_s1, %s514_s28  ;;  %p521_p5 = scmp.lt.u32.totalorder %s514_s28, %s937_s1 }
  0x11   : > { %p754_p11 = pnand %p452_p9, %p940_p1 }
  0x13   : > { %p516_p13 = pneg %p754_p11 }
  0x15   : > { %p517_p0 = pnand %p516_p13, %p515_p12 }
  0x17   : > { %p518_p3 = pneg %p517_p0 }
  0x19   : > { %p523_p7 = pnand %p521_p5, %p518_p3 }
  0x1b   : > { %526 = shalt.err (!%p523_p7)
}
  0x1c   : > { %s527_s6 = scalar_lea.vmem %s747_s22, 256  ;;  %p535_p2 = scmp.lt.s32.totalorder %s747_s22, %s747_s22 }
  0x1d   : > { %p528_p9 = scmp.ne.s32.totalorder %s747_s22, %s527_s6  ;;  %p536_p12 = scmp.lt.s32.totalorder %s527_s6, %s527_s6 }
  0x1f   : > { %p530_p10 = pnand %p528_p9, %p516_p13  ;;  %p537_p0 = por %p536_p12, %p535_p2 }
  0x21   : > { %p531_p1 = pneg %p530_p10 }
  0x23   : > { %p538_p6 = pnand %p537_p0, %p531_p1 }
  0x25   : > { %541 = shalt.err (!%p538_p6)
}
  0x26   : > { %s674_s7 = smov 128   ;;  %s675_s8 = smov 8  }
  0x27   : > { %455 = dma.hbm_to_vmem [thread:$0]  (!%p754_p11), %s937_s1, 256, %s747_s22, [#allocation6], %s674_s7, %s674_s7, %s675_s8  }
  0x28   : > { %s542_s21 = scalar_lea.hbm %s938_s2, 128 }
  0x29   : > { %p543_p2 = scmp.ne.s32.totalorder %s938_s2, %s542_s21  ;;  %p549_p10 = scmp.lt.u32.totalorder %s542_s21, %s938_s2 }
  0x2b   : > { %p545_p1 = pnand %p543_p2, %p516_p13 }
  0x2d   : > { %p546_p6 = pneg %p545_p1 }
  0x2f   : > { %p551_p3 = pnand %p549_p10, %p546_p6 }
  0x31   : > { %554 = shalt.err (!%p551_p3)
}
  0x32   : > { %s555_s22 = scalar_lea.vmem %s758_s25, 128  ;;  %p563_p12 = scmp.lt.s32.totalorder %s758_s25, %s758_s25 }
  0x33   : > { %p556_p5 = scmp.ne.s32.totalorder %s758_s25, %s555_s22  ;;  %p564_p0 = scmp.lt.s32.totalorder %s555_s22, %s555_s22 }
  0x35   : > { %p558_p7 = pnand %p556_p5, %p516_p13  ;;  %p565_p2 = por %p564_p0, %p563_p12 }
  0x37   : > { %p559_p9 = pneg %p558_p7 }
  0x39   : > { %p566_p1 = pnand %p565_p2, %p559_p9 }
  0x3b   : > { %569 = shalt.err (!%p566_p1)
}
  0x3c   : > { %458 = dma.hbm_to_vmem [thread:$0]  (!%p754_p11), %s938_s2, 128, %s758_s25, [#allocation6]  }
  0x3d   : > { %s813_s4 = sadd.s32 1, %s670_s15   ;;  %s27_s23 = sadd.s32 1, %s666_s14 }
  0x3e   : > { %s24_s5 = ssub.s32 %s670_s15, %s813_s4  ;;  %p34_p13 = scmp.ne.s32.totalorder %s666_s14, %s662_s13 }
  0x3f   : > { %p25_p6 = scmp.eq.s32.totalorder %s24_s5, 0  ;;  %p35_p10 = scmp.eq.s32.totalorder %s670_s15, 0 }
  0x40   : > { %p947_p3 = scmp.eq.s32.totalorder %s724_s16, 1  ;;  %p469_p7 = scmp.lt.s32.totalorder %s670_s15, 2 }
  0x41   : > { %s829_s7 = scalar_select %p25_p6, %s666_s14, %s27_s23  }
  0x42   : > { %p823_p5 = por %p947_p3, %p34_p13  ;;  %p36_p9 = por %p35_p10, %p34_p13 }
  0x43   : > { %s156_s8 = sand.u32 1, %s666_s14   ;;  %s416_s25 = sshll.u32 %s670_s15, 7 }
  0x44   : > { %s948_s6 = scalar_select %p823_p5, 1, 0 }
  0x45   : > { %s415_s9 = sshll.u32 %s156_s8, 3  ;;  %s836_s17 = scalar_lea.hbm %s936_s0, %s416_s25 }
  0x46   : > { %s160_s21 = scalar_lea.vmem [#allocation2], %s415_s9  ;;  %p840_p11 = pnand %p469_p7, %p36_p9 }
  0x47   : > { %s167_s24 = sshll.u32 %s160_s21, 4  ;;  %s157_s27 = scalar_lea.sflag [#allocation3], %s156_s8  ;;  %s838_s24 = int_to_ptr.vmem [resolvable:$true] %s167_s24 }
  0x48   : > { %s570_s28 = scalar_lea.hbm %s836_s17, 128  ;;  %p572_p0 = pneg %p840_p11 }
  0x49   : > { %p571_p12 = scmp.ne.s32.totalorder %s836_s17, %s570_s28  ;;  %s575_s30 = scalar_lea.hbm %s936_s0, 256 }
  0x4a   : > { %p576_p13 = scmp.lt.u32.totalorder %s836_s17, %s936_s0  ;;  %p577_p6 = scmp.lt.u32.totalorder %s575_s30, %s570_s28 }
  0x4b   : > { %p573_p2 = pnand %p572_p0, %p571_p12  ;;  %p579_p3 = scmp.lt.u32.totalorder %s570_s28, %s836_s17 }
  0x4c   : > { %p578_p10 = por %p577_p6, %p576_p13 }
  0x4d   : > { %p574_p1 = pneg %p573_p2 }
  0x4e   : > { %p580_p7 = por %p579_p3, %p578_p10 }
  0x50   : > { %p581_p9 = pnand %p580_p7, %p574_p1 }
  0x52   : > { %584 = shalt.err (!%p581_p9)
}
  0x53   : > { %s585_s8 = scalar_lea.vmem %s838_s24, 128  ;;  %s676_s9 = smov [#allocation2]  }
  0x54   : > { %p586_p12 = scmp.ne.s32.totalorder %s838_s24, %s585_s8  ;;  %s590_s25 = sshll.u32 %s676_s9, 4  ;;  %s591_s25 = int_to_ptr.vmem [resolvable:$false] %s590_s25 }
  0x55   : > { %s592_s10 = scalar_lea.vmem %s591_s25, 256  ;;  %p593_p4 = scmp.lt.s32.totalorder %s838_s24, %s591_s25 }
  0x56   : > { %p588_p2 = pnand %p586_p12, %p572_p0  ;;  %p594_p13 = scmp.lt.s32.totalorder %s592_s10, %s585_s8 }
  0x58   : > { %p589_p5 = pneg %p588_p2  ;;  %p595_p6 = por %p594_p13, %p593_p4 }
  0x5a   : > { %p596_p10 = pnand %p595_p6, %p589_p5 }
  0x5c   : > { %599 = shalt.err (!%p596_p10)
}
  0x5d   : > { %462 = dma.hbm_to_vmem [thread:$0]  (!%p840_p11), %s836_s17, 128, %s838_s24, %s157_s27  }
  0x5e   : > { %176 = sbr.rel (%p743_p8) target bundleno = 455 (0x1c7), region = 32  ;;  %s872_s11 = sand.u32 (!%p743_p8), 1, %s662_s13  }
  0x5f   : > { %s418_s21 = sshll.u32 (!%p743_p8), %s872_s11, 3  ;;  %s179_s28 = scalar_lea.sflag (!%p743_p8), [#allocation3], %s872_s11 }
  0x60   : > { %s182_s22 = scalar_lea.vmem (!%p743_p8), [#allocation2], %s418_s21  ;;  %p950_p4 = scmp.ne.s32.totalorder (!%p743_p8), %s943_s18, 0 }
  0x65   : > { %645 = dma.done.wait (%p950_p4), %s179_s28, 128  }
  0x66   : > { %647 = vsyncadd (%p950_p4), %s179_s28, 4294967168  ;;  %p951_p5 = scmp.eq.s32.totalorder %s724_s16, 0 }
  0x68   : > { %649 = dma.done.wait (%p951_p5), [#allocation6], 384   ;;  %p952_p8 = pmov %p951_p5 }
  0x69   : > { %v677_v0 = vmov 0.0|0.0   ;;  %vm678_vm0 = vmmov 0   ;;  %v679_v1 = vmov 0.0   ;;  %v213_v2 = vld [vmem:[%s182_s22] sm:$0xff]  ;;  %v214_v3 = vld [vmem:[#allocation5] sm:$0xff]  ;;  %v215_v4 = vld [vmem:[#allocation5 + $0x8] sm:$0xff] }
  0x6a   : > { %651 = vsyncadd (%p952_p8), [#allocation6], 4294966912  ;;  %437 = vmatprep.subr.bf16.mxu0 %v677_v0  ;;  %434 = vmatprep.mubr.msk.f32.mxu0 %vm678_vm0, %v679_v1  ;;  %s680_s20 = smov 4   ;;  %v218_v5 = vrot.slane %v213_v2, 1  ;;  %v438_v6 = vpack.c.bf16 %v215_v4, %v214_v3  ;;  %s681_s18 = smov 12   ;;  %v217_v7 = vrot.slane %v213_v2, 7 }
  0x6b   : > { %220 = vrot.lane.b32.xlu0 %v213_v2, %s680_s20  ;;  %vm227_vm1 = vcmask 31744   ;;  %vm229_vm2 = vcmask 97280   ;;  %vm231_vm3 = vcmask 130048   ;;  %v216_v12 = vld [vmem:[#allocation7] sm:$0xff]  ;;  %s424_s17 = sshll.u32 %s724_s16, 7  ;;  %s212_s24 = scalar_lea.vmem [#allocation8], %s418_s21 }
  0x6c   : > { %439 = vmatpush3.bf16.msra.mxu0 %v438_v6  ;;  %s321_s26 = sshll.u32 %s212_s24, 4  ;;  %s892_s30 = scalar_lea.hbm %s939_s3, %s424_s17  ;;  %s894_s26 = int_to_ptr.vmem [resolvable:$true] %s321_s26 }
  0x6d   : > { %s308_s23 = scalar_lea.sflag [#allocation4], %s872_s11  ;;  %s600_s5 = scalar_lea.vmem %s894_s26, 128 }
  0x6e   : > { %p601_p11 = scmp.ne.s32.totalorder %s894_s26, %s600_s5  ;;  %p953_p0 = scmp.ne.s32.totalorder %s948_s6, 0 }
  0x6f   : > { %224 = vrot.lane.b32.xlu0 %v218_v5, %s681_s18  ;;  %s682_s16 = smov [#allocation8]  }
  0x70   : > { %p602_p1 = pnand %p601_p11, %p953_p0  ;;  %s604_s8 = sshll.u32 %s682_s16, 4  ;;  %s605_s8 = int_to_ptr.vmem [resolvable:$false] %s604_s8 }
  0x71   : > { %s606_s9 = scalar_lea.vmem %s605_s8, 256  ;;  %p607_p7 = scmp.lt.s32.totalorder %s894_s26, %s605_s8 }
  0x72   : > { %p603_p3 = pneg %p602_p1  ;;  %p608_p9 = scmp.lt.s32.totalorder %s606_s9, %s600_s5 }
  0x74   : > { %p609_p12 = por %p608_p9, %p607_p7 }
  0x76   : > { %p610_p2 = pnand %p609_p12, %p603_p3 }
  0xdd   : > { %v221_v8 = vpop.permute.xlu0 %220 }
  0xde   : > { %v228_v9 = vsel %vm227_vm1, %v217_v7, %v221_v8 }
  0xe1   : > { %v225_v10 = vpop.permute.xlu0 %224 }
  0xe2   : > { %v230_v11 = vsel %vm229_vm2, %v228_v9, %v225_v10 }
  0xe3   : > { %435 = vmatmul.mubr.msk.f32.vlgmr.msra.gmra.mrb[0].mxu0 %vm231_vm3, %v230_v11 }
 0x1b6   : > { %v301_v13 = vpop.f32.mrb[0].mxu0 }
 0x1b7   : > { %v305_v14 = vadd.f32 %v301_v13, %v216_v12  ;;  %v436_v15 = vpop.f32.mrb[1].mxu0 }
 0x1b9   : > { %306 = vst [vmem:[%s212_s24] sm:$0xff] %v305_v14 }
 0x1ba   : > { %613 = shalt.err (!%p610_p2)
}
 0x1bb   : > { %s614_s25 = scalar_lea.hbm %s892_s30, 128  ;;  %s618_s21 = scalar_lea.hbm %s939_s3, 256 }
 0x1bc   : > { %p615_p13 = scmp.ne.s32.totalorder %s892_s30, %s614_s25  ;;  %p619_p4 = scmp.lt.u32.totalorder %s892_s30, %s939_s3 }
 0x1bd   : > { %p620_p5 = scmp.lt.u32.totalorder %s618_s21, %s614_s25  ;;  %p622_p11 = scmp.lt.u32.totalorder %s614_s25, %s892_s30 }
 0x1be   : > { %p616_p6 = pnand %p615_p13, %p953_p0 }
 0x1bf   : > { %p621_p8 = por %p620_p5, %p619_p4 }
 0x1c0   : > { %p617_p10 = pneg %p616_p6 }
 0x1c1   : > { %p623_p1 = por %p622_p11, %p621_p8 }
 0x1c3   : > { %p624_p3 = pnand %p623_p1, %p617_p10 }
 0x1c5   : > { %627 = shalt.err (!%p624_p3)
}
 0x1c6   : > { %450 = dma.vmem_to_hbm [thread:$0]  (%p953_p0), %s894_s26, 128, %s892_s30, %s308_s23  }
 0x1c7 PF: > { %s333_s20 = sand.u32 1, %s658_s12   ;;  %p954_p7 = scmp.ne.s32.totalorder %s944_s19, 0 }
 0x1c8   : > { %p955_p9 = scmp.ge.s32.totalorder %s670_s15, 2  ;;  %s334_s18 = scalar_lea.sflag [#allocation4], %s333_s20 }
 0x1ca   : > { %p464_p12 = pnand %p955_p9, %p954_p7 }
 0x1cc   : > { %653 = dma.done.wait (!%p464_p12), %s334_s18, 128  }
 0x1cd   : > { %655 = vsyncadd (!%p464_p12), %s334_s18, 4294967168  ;;  %p17_p2 = scmp.ge.s32.totalorder %s813_s4, 4   ;;  %s956_s12 = smov %s662_s13 }
 0x1ce   : > { %s957_s13 = smov %s666_s14  ;;  %s958_s14 = smov %s829_s7 }
 0x1cf   : > { %s959_s15 = smov %s813_s4  ;;  %19 = sbr.rel (!%p17_p2) target bundleno = 6 (0x6), region = 85 }
 0x1d6   :  { %339 = vsyncpa [#allocation3], 1 }
 0x1d7   :  { %341 = vsyncpa [#allocation3 + $0x1], 1 }
 0x1d8   :  { %342 = vsyncpa [#allocation6], 1 }
 0x1d9   :  { %343 = vsyncpa [#allocation4], 1 }
 0x1da   :  { %345 = vsyncpa [#allocation4 + $0x1], 1 }

</bundles_post_ra>
